<compile_context>
chip_gen: v5e
topology: v5e:2x2
jax: 0.10.0
libtpu: 0.0.40
codegen_flags: <defaults>
</compile_context>

<pallas_src>
import math

import jax
import jax.numpy as jnp
from jax.experimental import pallas as pl
from jax.experimental.pallas import tpu as pltpu

# ---- small, self-consistent config (scaled down FastSpeechConfig) ----------
B = 2            # batch
T = 8            # sequence length
D_MODEL = 32     # encoder_dim (scaled down from 256)
N_HEAD = 2       # encoder_head
D_K = 16
D_V = 16
D_INNER = 64     # encoder_conv1d_filter_size (scaled down from 1024)
K1 = 9           # fft_conv1d_kernel[0]
P1 = 4           # fft_conv1d_padding[0]
EPS = 1e-5       # nn.LayerNorm default eps

QKV_W = 3 * N_HEAD * D_K                       # 96 fused-projection width
VEC_W = max(QKV_W, D_INNER, D_MODEL)           # 96 packed-vector slab width
N_VEC = 8                                      # rows in the packed slab
# slab row indices
R_BQKV, R_B1, R_BFC, R_G1, R_BE1, R_B2, R_G2, R_BE2 = range(N_VEC)


# ---------------------------------------------------------------------------
# Fused FFTBlock kernel (one grid step == one batch element)
#   MHA + residual + LN1 + mask + ConvFFN + residual + LN2 + mask
# ---------------------------------------------------------------------------
def fft_block_kernel(lens_ref,                                   # SMEM (B,) i32
                     x_ref, wqkv_ref, vecs_ref, wfc_ref, w1_ref, w2_ref,
                     out_ref, attn_ref,
                     xpad_ref):
    f32 = jnp.float32
    b = pl.program_id(0)
    L = lens_ref[b]                               # valid length of this sequence

    x = x_ref[0]                                  # (T, D_MODEL)
    vec = vecs_ref[...]                           # (N_VEC, VEC_W) packed slab

    b_qkv = vec[R_BQKV:R_BQKV + 1, :QKV_W]        # (1, 96)
    b1    = vec[R_B1:R_B1 + 1, :D_INNER]          # (1, 64)
    bfc   = vec[R_BFC:R_BFC + 1, :D_MODEL]
    g1    = vec[R_G1:R_G1 + 1, :D_MODEL]
    be1   = vec[R_BE1:R_BE1 + 1, :D_MODEL]
    b2    = vec[R_B2:R_B2 + 1, :D_MODEL]
    g2    = vec[R_G2:R_G2 + 1, :D_MODEL]
    be2   = vec[R_BE2:R_BE2 + 1, :D_MODEL]

    # masks derived in-kernel from the sequence length (no mask DMAs)
    qpos = jax.lax.broadcasted_iota(jnp.int32, (T, 1), 0)
    kpos = jax.lax.broadcasted_iota(jnp.int32, (1, T), 1)
    npm = (qpos < L).astype(f32)                  # (T, 1)  non_pad_mask
    kmask = kpos >= L                             # (1, T)  key-padding mask

    # ----------------------- multi-head self-attention -----------------------
    # ONE fused QKV projection: (T, D_MODEL) @ (D_MODEL, 3*H*Dk)
    qkv = jnp.dot(x, wqkv_ref[...], preferred_element_type=f32) + b_qkv
    inv_temp = 1.0 / math.sqrt(D_K)

    o = bfc                                       # fc-bias starts the accumulator
    for h in range(N_HEAD):                       # static unroll, per-head views
        qh = qkv[:, h * D_K:(h + 1) * D_K]                            # (T, D_K)
        kh = qkv[:, N_HEAD * D_K + h * D_K:
                    N_HEAD * D_K + (h + 1) * D_K]                     # (T, D_K)
        vh = qkv[:, 2 * N_HEAD * D_K + h * D_V:
                    2 * N_HEAD * D_K + (h + 1) * D_V]                 # (T, D_V)

        # scores = q @ k^T / sqrt(d_k)   (contract last dims, no transpose mat.)
        s = jax.lax.dot_general(qh, kh, (((1,), (1,)), ((), ())),
                                preferred_element_type=f32) * inv_temp
        s = jnp.where(kmask, -1e9, s)             # finite masked_fill (NaN-safe)

        m = jnp.max(s, axis=-1, keepdims=True)
        e = jnp.exp(s - m)
        p = e * pl.reciprocal(jnp.sum(e, axis=-1, keepdims=True), approx=True)
        attn_ref[h, 0] = p                        # head-major (n_head, B, T, T)

        ctx = jnp.dot(p, vh, preferred_element_type=f32)              # (T, D_V)
        # fold the head-concat into the output projection: o += ctx @ Wfc[h]
        o = o + jnp.dot(ctx, wfc_ref[h], preferred_element_type=f32)

    # residual + LayerNorm(d_model) + non-pad mask
    o = o + x
    mu = jnp.mean(o, axis=-1, keepdims=True)
    var = jnp.mean((o - mu) ** 2, axis=-1, keepdims=True)
    o = (o - mu) * jax.lax.rsqrt(var + EPS) * g1 + be1
    xm = o * npm                                  # enc_output *= non_pad_mask

    # ----------------------- position-wise feed-forward ----------------------
    # Conv1d(d_model -> d_inner, k=9, pad=4) as 9 accumulated tap matmuls.
    xpad_ref[0:P1, :] = jnp.zeros((P1, D_MODEL), f32)        # zero halos only
    xpad_ref[P1 + T:P1 + T + P1, :] = jnp.zeros((P1, D_MODEL), f32)
    xpad_ref[P1:P1 + T, :] = xm                              # interior once

    h1 = jnp.dot(xpad_ref[0:T, :], w1_ref[0], preferred_element_type=f32) + b1
    for kk in range(1, K1):
        h1 = h1 + jnp.dot(xpad_ref[kk:kk + T, :], w1_ref[kk],
                          preferred_element_type=f32)
    h1 = jnp.maximum(h1, 0.0)                     # ReLU

    # Conv1d(d_inner -> d_model, k=1) == matmul; residual is the masked input
    o2 = jnp.dot(h1, w2_ref[...], preferred_element_type=f32) + b2 + xm
    mu2 = jnp.mean(o2, axis=-1, keepdims=True)
    var2 = jnp.mean((o2 - mu2) ** 2, axis=-1, keepdims=True)
    o2 = (o2 - mu2) * jax.lax.rsqrt(var2 + EPS) * g2 + be2

    out_ref[0] = o2 * npm                         # final non-pad mask


# ---------------------------------------------------------------------------
# Parameter initialization (deterministic, mirrors the PyTorch module shapes)
# ---------------------------------------------------------------------------
def init_params(key):
    ks = jax.random.split(key, 8)
    std_qk = math.sqrt(2.0 / (D_MODEL + D_K))
    std_v = math.sqrt(2.0 / (D_MODEL + D_V))
    std_fc = math.sqrt(2.0 / (N_HEAD * D_V + D_MODEL))   # xavier_normal
    std_c1 = math.sqrt(2.0 / (D_MODEL * K1))
    std_c2 = math.sqrt(2.0 / D_INNER)
    p = {
        # Linear weights stored (in, out) so y = x @ W + b matches x @ W_pt.T + b
        "wq": std_qk * jax.random.normal(ks[0], (D_MODEL, N_HEAD * D_K), jnp.float32),
        "wk": std_qk * jax.random.normal(ks[1], (D_MODEL, N_HEAD * D_K), jnp.float32),
        "wv": std_v * jax.random.normal(ks[2], (D_MODEL, N_HEAD * D_V), jnp.float32),
        "bq": jnp.zeros((1, N_HEAD * D_K), jnp.float32),
        "bk": jnp.zeros((1, N_HEAD * D_K), jnp.float32),
        "bv": jnp.zeros((1, N_HEAD * D_V), jnp.float32),
        "wfc": std_fc * jax.random.normal(ks[3], (N_HEAD * D_V, D_MODEL), jnp.float32),
        "bfc": jnp.zeros((1, D_MODEL), jnp.float32),
        "ln1_g": jnp.ones((1, D_MODEL), jnp.float32),
        "ln1_b": jnp.zeros((1, D_MODEL), jnp.float32),
        # Conv1d weights: PyTorch (out, in, k) -> stored as (k, in, out)
        "w1": std_c1 * jax.random.normal(ks[4], (K1, D_MODEL, D_INNER), jnp.float32),
        "b1": jnp.zeros((1, D_INNER), jnp.float32),
        "w2": std_c2 * jax.random.normal(ks[5], (D_INNER, D_MODEL), jnp.float32),
        "b2": jnp.zeros((1, D_MODEL), jnp.float32),
        "ln2_g": jnp.ones((1, D_MODEL), jnp.float32),
        "ln2_b": jnp.zeros((1, D_MODEL), jnp.float32),
    }
    return p


# ---------------------------------------------------------------------------
# One-time weight packing (hoisted out of the per-call path)
# ---------------------------------------------------------------------------
def pack_params(params):
    w_qkv = jnp.concatenate([params["wq"], params["wk"], params["wv"]], axis=1)
    b_qkv = jnp.concatenate([params["bq"], params["bk"], params["bv"]], axis=1)

    def row(v):
        v = v.reshape(1, -1)
        return jnp.pad(v, ((0, 0), (0, VEC_W - v.shape[1])))

    vecs = jnp.concatenate([
        row(b_qkv),           # R_BQKV
        row(params["b1"]),    # R_B1
        row(params["bfc"]),   # R_BFC
        row(params["ln1_g"]), # R_G1
        row(params["ln1_b"]), # R_BE1
        row(params["b2"]),    # R_B2
        row(params["ln2_g"]), # R_G2
        row(params["ln2_b"]), # R_BE2
    ], axis=0)                                               # (N_VEC, VEC_W)

    return {
        "w_qkv": w_qkv,                                      # (D_MODEL, 96)
        "vecs": vecs,                                        # (8, 96)
        "wfc": params["wfc"].reshape(N_HEAD, D_V, D_MODEL),  # (2, 16, 32)
        "w1": params["w1"],                                  # (9, 32, 64)
        "w2": params["w2"],                                  # (64, 32)
    }


# ---------------------------------------------------------------------------
# Wrapper: FFTBlock forward (single fused pallas_call, grid parallel over batch)
# ---------------------------------------------------------------------------
def fft_block(enc_input, lengths, packed):
    def _rep(shape):                                 # replicated (constant) block
        z = (0,) * len(shape)
        return pl.BlockSpec(shape, lambda b, lens, z=z: z)

    call = pl.pallas_call(
        fft_block_kernel,
        out_shape=(
            jax.ShapeDtypeStruct((B, T, D_MODEL), jnp.float32),
            jax.ShapeDtypeStruct((N_HEAD, B, T, T), jnp.float32),
        ),
        grid_spec=pltpu.PrefetchScalarGridSpec(
            num_scalar_prefetch=1,                   # lengths -> SMEM
            grid=(B,),                               # one batch element per step
            in_specs=[
                pl.BlockSpec((1, T, D_MODEL), lambda b, lens: (b, 0, 0)),   # x
                _rep((D_MODEL, QKV_W)),                                      # Wqkv
                _rep((N_VEC, VEC_W)),                                        # vecs
                _rep((N_HEAD, D_V, D_MODEL)),                                # Wfc
                _rep((K1, D_MODEL, D_INNER)),                                # W1
                _rep((D_INNER, D_MODEL)),                                    # W2
            ],
            out_specs=[
                pl.BlockSpec((1, T, D_MODEL), lambda b, lens: (b, 0, 0)),
                pl.BlockSpec((N_HEAD, 1, T, T), lambda b, lens: (0, b, 0, 0)),
            ],
            scratch_shapes=[pltpu.VMEM((T + 2 * P1, D_MODEL), jnp.float32)],
        ),
        compiler_params=pltpu.CompilerParams(
            dimension_semantics=("parallel",)),      # 2 TCs on v7x take one batch each
    )
    enc_output, attn4 = call(
        lengths.astype(jnp.int32), enc_input,
        packed["w_qkv"], packed["vecs"], packed["wfc"], packed["w1"], packed["w2"],
    )
    # contiguous (free) reshape to PyTorch's head-major (n_head*B, T, T)
    return enc_output, attn4.reshape(N_HEAD * B, T, T)


# ---------------------------------------------------------------------------
if __name__ == "__main__":
    key = jax.random.PRNGKey(0)
    k_par, k_x = jax.random.split(key)

    params = init_params(k_par)
    packed = pack_params(params)                     # one-time weight re-layout
    enc_input = jax.random.normal(k_x, (B, T, D_MODEL), jnp.float32)

    # per-sequence valid lengths; masks are derived from these inside the kernel
    # (equivalent to non_pad_mask / slf_attn_mask built from lengths in FastSpeech)
    lengths = jnp.array([T, 6], dtype=jnp.int32)

    fwd = jax.jit(fft_block)
    enc_output, enc_slf_attn = fwd(enc_input, lengths, packed)
    jax.block_until_ready((enc_output, enc_slf_attn))

    assert enc_output.shape == (B, T, D_MODEL)
    assert enc_slf_attn.shape == (N_HEAD * B, T, T)
    assert bool(jnp.all(jnp.isfinite(enc_output)))
    assert bool(jnp.all(jnp.isfinite(enc_slf_attn)))
    print("KERNEL_OK")
</pallas_src>

<mosaic_0001>
module attributes {stable_mosaic.version = 11 : i64} {
  func.func @fft_block_kernel(%arg0: i32, %arg1: memref<2xi32, #tpu.memory_space<smem>>, %arg2: memref<1x8x32xf32, #tpu.memory_space<vmem>>, %arg3: memref<32x96xf32, #tpu.memory_space<vmem>>, %arg4: memref<8x96xf32, #tpu.memory_space<vmem>>, %arg5: memref<2x16x32xf32, #tpu.memory_space<vmem>>, %arg6: memref<9x32x64xf32, #tpu.memory_space<vmem>>, %arg7: memref<64x32xf32, #tpu.memory_space<vmem>>, %arg8: memref<1x8x32xf32, #tpu.memory_space<vmem>>, %arg9: memref<2x1x8x8xf32, #tpu.memory_space<vmem>>, %arg10: memref<16x32xf32, #tpu.memory_space<vmem>>) attributes {dimension_semantics = [#tpu.dimension_semantics<parallel>], iteration_bounds = array<i64: 2>, scalar_prefetch = 1 : i64, scratch_operands = 1 : i64, tpu.core_type = #tpu.core_type<tc>, window_params = [{transform_indices = @transform_0, window_bounds = array<i64: 1, 8, 32>}, {pipeline_mode = #tpu.pipeline_mode<synchronous>, transform_indices = @transform_1, window_bounds = array<i64: 32, 96>}, {pipeline_mode = #tpu.pipeline_mode<synchronous>, transform_indices = @transform_2, window_bounds = array<i64: 8, 96>}, {pipeline_mode = #tpu.pipeline_mode<synchronous>, transform_indices = @transform_3, window_bounds = array<i64: 2, 16, 32>}, {pipeline_mode = #tpu.pipeline_mode<synchronous>, transform_indices = @transform_4, window_bounds = array<i64: 9, 32, 64>}, {pipeline_mode = #tpu.pipeline_mode<synchronous>, transform_indices = @transform_5, window_bounds = array<i64: 64, 32>}, {transform_indices = @transform_6, window_bounds = array<i64: 1, 8, 32>}, {transform_indices = @transform_7, window_bounds = array<i64: 2, 1, 8, 8>}]} {
    %0 = arith.index_cast %arg0 : i32 to index
    %1 = memref.load %arg1[%0] : memref<2xi32, #tpu.memory_space<smem>>
    %c0 = arith.constant 0 : index
    %c0_0 = arith.constant 0 : index
    %c0_1 = arith.constant 0 : index
    %2 = vector.load %arg2[%c0, %c0_0, %c0_1] : memref<1x8x32xf32, #tpu.memory_space<vmem>>, vector<1x8x32xf32>
    %3 = vector.shape_cast %2 : vector<1x8x32xf32> to vector<8x32xf32>
    %c0_2 = arith.constant 0 : index
    %c0_3 = arith.constant 0 : index
    %4 = vector.load %arg4[%c0_2, %c0_3] : memref<8x96xf32, #tpu.memory_space<vmem>>, vector<8x96xf32>
    %5 = vector.extract_strided_slice %4 {offsets = [0, 0], sizes = [1, 96], strides = [1, 1]} : vector<8x96xf32> to vector<1x96xf32>
    %6 = vector.extract_strided_slice %4 {offsets = [1, 0], sizes = [1, 64], strides = [1, 1]} : vector<8x96xf32> to vector<1x64xf32>
    %7 = vector.extract_strided_slice %4 {offsets = [2, 0], sizes = [1, 32], strides = [1, 1]} : vector<8x96xf32> to vector<1x32xf32>
    %8 = vector.extract_strided_slice %4 {offsets = [3, 0], sizes = [1, 32], strides = [1, 1]} : vector<8x96xf32> to vector<1x32xf32>
    %9 = vector.extract_strided_slice %4 {offsets = [4, 0], sizes = [1, 32], strides = [1, 1]} : vector<8x96xf32> to vector<1x32xf32>
    %10 = vector.extract_strided_slice %4 {offsets = [5, 0], sizes = [1, 32], strides = [1, 1]} : vector<8x96xf32> to vector<1x32xf32>
    %11 = vector.extract_strided_slice %4 {offsets = [6, 0], sizes = [1, 32], strides = [1, 1]} : vector<8x96xf32> to vector<1x32xf32>
    %12 = vector.extract_strided_slice %4 {offsets = [7, 0], sizes = [1, 32], strides = [1, 1]} : vector<8x96xf32> to vector<1x32xf32>
    %13 = tpu.iota {dimensions = array<i32: 0>} : vector<8x1xi32>
    %14 = tpu.iota {dimensions = array<i32: 1>} : vector<1x8xi32>
    %15 = vector.broadcast %1 : i32 to vector<8x1xi32>
    %16 = arith.cmpi slt, %13, %15 : vector<8x1xi32>
    %17 = arith.extui %16 : vector<8x1xi1> to vector<8x1xi32>
    %18 = arith.sitofp %17 : vector<8x1xi32> to vector<8x1xf32>
    %19 = vector.broadcast %1 : i32 to vector<1x8xi32>
    %20 = arith.cmpi sge, %14, %19 : vector<1x8xi32>
    %c0_4 = arith.constant 0 : index
    %c0_5 = arith.constant 0 : index
    %21 = vector.load %arg3[%c0_4, %c0_5] : memref<32x96xf32, #tpu.memory_space<vmem>>, vector<32x96xf32>
    %cst = arith.constant dense<0.000000e+00> : vector<8x96xf32>
    %22 = tpu.matmul %3, %21, %cst {dimension_numbers = #tpu.dot_dimension_numbers<[1], [0], [0], [1], [0, 0, 1, 1], [], []>} : vector<8x32xf32>, vector<32x96xf32>, vector<8x96xf32> -> vector<8x96xf32>
    %23 = vector.broadcast %5 : vector<1x96xf32> to vector<8x96xf32>
    %24 = arith.addf %22, %23 : vector<8x96xf32>
    %25 = vector.extract_strided_slice %24 {offsets = [0, 0], sizes = [8, 16], strides = [1, 1]} : vector<8x96xf32> to vector<8x16xf32>
    %26 = vector.extract_strided_slice %24 {offsets = [0, 32], sizes = [8, 16], strides = [1, 1]} : vector<8x96xf32> to vector<8x16xf32>
    %27 = vector.extract_strided_slice %24 {offsets = [0, 64], sizes = [8, 16], strides = [1, 1]} : vector<8x96xf32> to vector<8x16xf32>
    %cst_6 = arith.constant dense<0.000000e+00> : vector<8x8xf32>
    %28 = tpu.matmul %25, %26, %cst_6 {dimension_numbers = #tpu.dot_dimension_numbers<[1], [1], [0], [0], [0, 0, 1, 0], [], []>} : vector<8x16xf32>, vector<8x16xf32>, vector<8x8xf32> -> vector<8x8xf32>
    %cst_7 = arith.constant 2.500000e-01 : f32
    %29 = vector.broadcast %cst_7 : f32 to vector<8x8xf32>
    %30 = arith.mulf %28, %29 : vector<8x8xf32>
    %cst_8 = arith.constant -1.000000e+09 : f32
    %31 = vector.shape_cast %20 : vector<1x8xi1> to vector<1x8xi1>
    %32 = vector.broadcast %31 : vector<1x8xi1> to vector<8x8xi1>
    %33 = vector.broadcast %cst_8 : f32 to vector<8x8xf32>
    %34 = arith.select %32, %33, %30 : vector<8x8xi1>, vector<8x8xf32>
    %cst_9 = arith.constant dense<0xFF800000> : vector<8xf32>
    %35 = vector.multi_reduction <maximumf>, %34, %cst_9 [1] : vector<8x8xf32> to vector<8xf32>
    %36 = vector.shape_cast %35 : vector<8xf32> to vector<8x1xf32>
    %37 = vector.broadcast %36 : vector<8x1xf32> to vector<8x8xf32>
    %38 = arith.subf %34, %37 : vector<8x8xf32>
    %39 = math.exp %38 : vector<8x8xf32>
    %cst_10 = arith.constant dense<0.000000e+00> : vector<8xf32>
    %40 = vector.multi_reduction <add>, %39, %cst_10 [1] : vector<8x8xf32> to vector<8xf32>
    %41 = vector.shape_cast %40 : vector<8xf32> to vector<8x1xf32>
    %42 = tpu.reciprocal %41 {approx = true} : vector<8x1xf32> -> vector<8x1xf32>
    %43 = vector.broadcast %42 : vector<8x1xf32> to vector<8x8xf32>
    %44 = arith.mulf %39, %43 : vector<8x8xf32>
    %c0_11 = arith.constant 0 : index
    %c0_12 = arith.constant 0 : index
    %c0_13 = arith.constant 0 : index
    %c0_14 = arith.constant 0 : index
    %45 = vector.load %arg9[%c0_11, %c0_12, %c0_13, %c0_14] : memref<2x1x8x8xf32, #tpu.memory_space<vmem>>, vector<1x1x8x8xf32>
    %46 = vector.shape_cast %45 : vector<1x1x8x8xf32> to vector<8x8xf32>
    %47 = vector.shape_cast %44 : vector<8x8xf32> to vector<1x1x8x8xf32>
    tpu.vector_store %arg9[%c0_11, %c0_12, %c0_13, %c0_14], %47 {strides = array<i32>} : memref<2x1x8x8xf32, #tpu.memory_space<vmem>>, vector<1x1x8x8xf32>,
    %cst_15 = arith.constant dense<0.000000e+00> : vector<8x16xf32>
    %48 = tpu.matmul %44, %27, %cst_15 {dimension_numbers = #tpu.dot_dimension_numbers<[1], [0], [0], [1], [0, 0, 1, 1], [], []>} : vector<8x8xf32>, vector<8x16xf32>, vector<8x16xf32> -> vector<8x16xf32>
    %c0_16 = arith.constant 0 : index
    %c0_17 = arith.constant 0 : index
    %c0_18 = arith.constant 0 : index
    %49 = vector.load %arg5[%c0_16, %c0_17, %c0_18] : memref<2x16x32xf32, #tpu.memory_space<vmem>>, vector<1x16x32xf32>
    %50 = vector.shape_cast %49 : vector<1x16x32xf32> to vector<16x32xf32>
    %cst_19 = arith.constant dense<0.000000e+00> : vector<8x32xf32>
    %51 = tpu.matmul %48, %50, %cst_19 {dimension_numbers = #tpu.dot_dimension_numbers<[1], [0], [0], [1], [0, 0, 1, 1], [], []>} : vector<8x16xf32>, vector<16x32xf32>, vector<8x32xf32> -> vector<8x32xf32>
    %52 = vector.broadcast %7 : vector<1x32xf32> to vector<8x32xf32>
    %53 = arith.addf %52, %51 : vector<8x32xf32>
    %54 = vector.extract_strided_slice %24 {offsets = [0, 16], sizes = [8, 16], strides = [1, 1]} : vector<8x96xf32> to vector<8x16xf32>
    %55 = vector.extract_strided_slice %24 {offsets = [0, 48], sizes = [8, 16], strides = [1, 1]} : vector<8x96xf32> to vector<8x16xf32>
    %56 = vector.extract_strided_slice %24 {offsets = [0, 80], sizes = [8, 16], strides = [1, 1]} : vector<8x96xf32> to vector<8x16xf32>
    %cst_20 = arith.constant dense<0.000000e+00> : vector<8x8xf32>
    %57 = tpu.matmul %54, %55, %cst_20 {dimension_numbers = #tpu.dot_dimension_numbers<[1], [1], [0], [0], [0, 0, 1, 0], [], []>} : vector<8x16xf32>, vector<8x16xf32>, vector<8x8xf32> -> vector<8x8xf32>
    %cst_21 = arith.constant 2.500000e-01 : f32
    %58 = vector.broadcast %cst_21 : f32 to vector<8x8xf32>
    %59 = arith.mulf %57, %58 : vector<8x8xf32>
    %cst_22 = arith.constant -1.000000e+09 : f32
    %60 = vector.shape_cast %20 : vector<1x8xi1> to vector<1x8xi1>
    %61 = vector.broadcast %60 : vector<1x8xi1> to vector<8x8xi1>
    %62 = vector.broadcast %cst_22 : f32 to vector<8x8xf32>
    %63 = arith.select %61, %62, %59 : vector<8x8xi1>, vector<8x8xf32>
    %cst_23 = arith.constant dense<0xFF800000> : vector<8xf32>
    %64 = vector.multi_reduction <maximumf>, %63, %cst_23 [1] : vector<8x8xf32> to vector<8xf32>
    %65 = vector.shape_cast %64 : vector<8xf32> to vector<8x1xf32>
    %66 = vector.broadcast %65 : vector<8x1xf32> to vector<8x8xf32>
    %67 = arith.subf %63, %66 : vector<8x8xf32>
    %68 = math.exp %67 : vector<8x8xf32>
    %cst_24 = arith.constant dense<0.000000e+00> : vector<8xf32>
    %69 = vector.multi_reduction <add>, %68, %cst_24 [1] : vector<8x8xf32> to vector<8xf32>
    %70 = vector.shape_cast %69 : vector<8xf32> to vector<8x1xf32>
    %71 = tpu.reciprocal %70 {approx = true} : vector<8x1xf32> -> vector<8x1xf32>
    %72 = vector.broadcast %71 : vector<8x1xf32> to vector<8x8xf32>
    %73 = arith.mulf %68, %72 : vector<8x8xf32>
    %c1 = arith.constant 1 : index
    %c0_25 = arith.constant 0 : index
    %c0_26 = arith.constant 0 : index
    %c0_27 = arith.constant 0 : index
    %74 = vector.load %arg9[%c1, %c0_25, %c0_26, %c0_27] : memref<2x1x8x8xf32, #tpu.memory_space<vmem>>, vector<1x1x8x8xf32>
    %75 = vector.shape_cast %74 : vector<1x1x8x8xf32> to vector<8x8xf32>
    %76 = vector.shape_cast %73 : vector<8x8xf32> to vector<1x1x8x8xf32>
    tpu.vector_store %arg9[%c1, %c0_25, %c0_26, %c0_27], %76 {strides = array<i32>} : memref<2x1x8x8xf32, #tpu.memory_space<vmem>>, vector<1x1x8x8xf32>,
    %cst_28 = arith.constant dense<0.000000e+00> : vector<8x16xf32>
    %77 = tpu.matmul %73, %56, %cst_28 {dimension_numbers = #tpu.dot_dimension_numbers<[1], [0], [0], [1], [0, 0, 1, 1], [], []>} : vector<8x8xf32>, vector<8x16xf32>, vector<8x16xf32> -> vector<8x16xf32>
    %c1_29 = arith.constant 1 : index
    %c0_30 = arith.constant 0 : index
    %c0_31 = arith.constant 0 : index
    %78 = vector.load %arg5[%c1_29, %c0_30, %c0_31] : memref<2x16x32xf32, #tpu.memory_space<vmem>>, vector<1x16x32xf32>
    %79 = vector.shape_cast %78 : vector<1x16x32xf32> to vector<16x32xf32>
    %cst_32 = arith.constant dense<0.000000e+00> : vector<8x32xf32>
    %80 = tpu.matmul %77, %79, %cst_32 {dimension_numbers = #tpu.dot_dimension_numbers<[1], [0], [0], [1], [0, 0, 1, 1], [], []>} : vector<8x16xf32>, vector<16x32xf32>, vector<8x32xf32> -> vector<8x32xf32>
    %81 = arith.addf %53, %80 : vector<8x32xf32>
    %82 = arith.addf %81, %3 : vector<8x32xf32>
    %cst_33 = arith.constant dense<0.000000e+00> : vector<8xf32>
    %83 = vector.multi_reduction <add>, %82, %cst_33 [1] : vector<8x32xf32> to vector<8xf32>
    %84 = vector.shape_cast %83 : vector<8xf32> to vector<8x1xf32>
    %cst_34 = arith.constant 3.200000e+01 : f32
    %85 = vector.broadcast %cst_34 : f32 to vector<8x1xf32>
    %86 = arith.divf %84, %85 : vector<8x1xf32>
    %87 = vector.broadcast %86 : vector<8x1xf32> to vector<8x32xf32>
    %88 = arith.subf %82, %87 : vector<8x32xf32>
    %89 = arith.mulf %88, %88 : vector<8x32xf32>
    %cst_35 = arith.constant dense<0.000000e+00> : vector<8xf32>
    %90 = vector.multi_reduction <add>, %89, %cst_35 [1] : vector<8x32xf32> to vector<8xf32>
    %91 = vector.shape_cast %90 : vector<8xf32> to vector<8x1xf32>
    %cst_36 = arith.constant 3.200000e+01 : f32
    %92 = vector.broadcast %cst_36 : f32 to vector<8x1xf32>
    %93 = arith.divf %91, %92 : vector<8x1xf32>
    %94 = vector.broadcast %86 : vector<8x1xf32> to vector<8x32xf32>
    %95 = arith.subf %82, %94 : vector<8x32xf32>
    %cst_37 = arith.constant 9.99999974E-6 : f32
    %96 = vector.broadcast %cst_37 : f32 to vector<8x1xf32>
    %97 = arith.addf %93, %96 : vector<8x1xf32>
    %98 = math.rsqrt %97 : vector<8x1xf32>
    %99 = vector.broadcast %98 : vector<8x1xf32> to vector<8x32xf32>
    %100 = arith.mulf %95, %99 : vector<8x32xf32>
    %101 = vector.broadcast %8 : vector<1x32xf32> to vector<8x32xf32>
    %102 = arith.mulf %100, %101 : vector<8x32xf32>
    %103 = vector.broadcast %9 : vector<1x32xf32> to vector<8x32xf32>
    %104 = arith.addf %102, %103 : vector<8x32xf32>
    %105 = vector.broadcast %18 : vector<8x1xf32> to vector<8x32xf32>
    %106 = arith.mulf %104, %105 : vector<8x32xf32>
    %cst_38 = arith.constant 0.000000e+00 : f32
    %107 = vector.broadcast %cst_38 : f32 to vector<4x32xf32>
    %c0_39 = arith.constant 0 : index
    %c0_40 = arith.constant 0 : index
    %108 = vector.load %arg10[%c0_39, %c0_40] : memref<16x32xf32, #tpu.memory_space<vmem>>, vector<4x32xf32>
    tpu.vector_store %arg10[%c0_39, %c0_40], %107 {strides = array<i32>} : memref<16x32xf32, #tpu.memory_space<vmem>>, vector<4x32xf32>,
    %cst_41 = arith.constant 0.000000e+00 : f32
    %109 = vector.broadcast %cst_41 : f32 to vector<4x32xf32>
    %c12 = arith.constant 12 : index
    %c0_42 = arith.constant 0 : index
    %110 = vector.load %arg10[%c12, %c0_42] : memref<16x32xf32, #tpu.memory_space<vmem>>, vector<4x32xf32>
    tpu.vector_store %arg10[%c12, %c0_42], %109 {strides = array<i32>} : memref<16x32xf32, #tpu.memory_space<vmem>>, vector<4x32xf32>,
    %c4 = arith.constant 4 : index
    %c0_43 = arith.constant 0 : index
    %111 = vector.load %arg10[%c4, %c0_43] : memref<16x32xf32, #tpu.memory_space<vmem>>, vector<8x32xf32>
    tpu.vector_store %arg10[%c4, %c0_43], %106 {strides = array<i32>} : memref<16x32xf32, #tpu.memory_space<vmem>>, vector<8x32xf32>,
    %c0_44 = arith.constant 0 : index
    %c0_45 = arith.constant 0 : index
    %112 = vector.load %arg10[%c0_44, %c0_45] : memref<16x32xf32, #tpu.memory_space<vmem>>, vector<8x32xf32>
    %c0_46 = arith.constant 0 : index
    %c0_47 = arith.constant 0 : index
    %c0_48 = arith.constant 0 : index
    %113 = vector.load %arg6[%c0_46, %c0_47, %c0_48] : memref<9x32x64xf32, #tpu.memory_space<vmem>>, vector<1x32x64xf32>
    %114 = vector.shape_cast %113 : vector<1x32x64xf32> to vector<32x64xf32>
    %cst_49 = arith.constant dense<0.000000e+00> : vector<8x64xf32>
    %115 = tpu.matmul %112, %114, %cst_49 {dimension_numbers = #tpu.dot_dimension_numbers<[1], [0], [0], [1], [0, 0, 1, 1], [], []>} : vector<8x32xf32>, vector<32x64xf32>, vector<8x64xf32> -> vector<8x64xf32>
    %116 = vector.broadcast %6 : vector<1x64xf32> to vector<8x64xf32>
    %117 = arith.addf %115, %116 : vector<8x64xf32>
    %c1_50 = arith.constant 1 : index
    %c0_51 = arith.constant 0 : index
    %118 = vector.load %arg10[%c1_50, %c0_51] : memref<16x32xf32, #tpu.memory_space<vmem>>, vector<8x32xf32>
    %c1_52 = arith.constant 1 : index
    %c0_53 = arith.constant 0 : index
    %c0_54 = arith.constant 0 : index
    %119 = vector.load %arg6[%c1_52, %c0_53, %c0_54] : memref<9x32x64xf32, #tpu.memory_space<vmem>>, vector<1x32x64xf32>
    %120 = vector.shape_cast %119 : vector<1x32x64xf32> to vector<32x64xf32>
    %cst_55 = arith.constant dense<0.000000e+00> : vector<8x64xf32>
    %121 = tpu.matmul %118, %120, %cst_55 {dimension_numbers = #tpu.dot_dimension_numbers<[1], [0], [0], [1], [0, 0, 1, 1], [], []>} : vector<8x32xf32>, vector<32x64xf32>, vector<8x64xf32> -> vector<8x64xf32>
    %122 = arith.addf %117, %121 : vector<8x64xf32>
    %c2 = arith.constant 2 : index
    %c0_56 = arith.constant 0 : index
    %123 = vector.load %arg10[%c2, %c0_56] : memref<16x32xf32, #tpu.memory_space<vmem>>, vector<8x32xf32>
    %c2_57 = arith.constant 2 : index
    %c0_58 = arith.constant 0 : index
    %c0_59 = arith.constant 0 : index
    %124 = vector.load %arg6[%c2_57, %c0_58, %c0_59] : memref<9x32x64xf32, #tpu.memory_space<vmem>>, vector<1x32x64xf32>
    %125 = vector.shape_cast %124 : vector<1x32x64xf32> to vector<32x64xf32>
    %cst_60 = arith.constant dense<0.000000e+00> : vector<8x64xf32>
    %126 = tpu.matmul %123, %125, %cst_60 {dimension_numbers = #tpu.dot_dimension_numbers<[1], [0], [0], [1], [0, 0, 1, 1], [], []>} : vector<8x32xf32>, vector<32x64xf32>, vector<8x64xf32> -> vector<8x64xf32>
    %127 = arith.addf %122, %126 : vector<8x64xf32>
    %c3 = arith.constant 3 : index
    %c0_61 = arith.constant 0 : index
    %128 = vector.load %arg10[%c3, %c0_61] : memref<16x32xf32, #tpu.memory_space<vmem>>, vector<8x32xf32>
    %c3_62 = arith.constant 3 : index
    %c0_63 = arith.constant 0 : index
    %c0_64 = arith.constant 0 : index
    %129 = vector.load %arg6[%c3_62, %c0_63, %c0_64] : memref<9x32x64xf32, #tpu.memory_space<vmem>>, vector<1x32x64xf32>
    %130 = vector.shape_cast %129 : vector<1x32x64xf32> to vector<32x64xf32>
    %cst_65 = arith.constant dense<0.000000e+00> : vector<8x64xf32>
    %131 = tpu.matmul %128, %130, %cst_65 {dimension_numbers = #tpu.dot_dimension_numbers<[1], [0], [0], [1], [0, 0, 1, 1], [], []>} : vector<8x32xf32>, vector<32x64xf32>, vector<8x64xf32> -> vector<8x64xf32>
    %132 = arith.addf %127, %131 : vector<8x64xf32>
    %c4_66 = arith.constant 4 : index
    %c0_67 = arith.constant 0 : index
    %133 = vector.load %arg10[%c4_66, %c0_67] : memref<16x32xf32, #tpu.memory_space<vmem>>, vector<8x32xf32>
    %c4_68 = arith.constant 4 : index
    %c0_69 = arith.constant 0 : index
    %c0_70 = arith.constant 0 : index
    %134 = vector.load %arg6[%c4_68, %c0_69, %c0_70] : memref<9x32x64xf32, #tpu.memory_space<vmem>>, vector<1x32x64xf32>
    %135 = vector.shape_cast %134 : vector<1x32x64xf32> to vector<32x64xf32>
    %cst_71 = arith.constant dense<0.000000e+00> : vector<8x64xf32>
    %136 = tpu.matmul %133, %135, %cst_71 {dimension_numbers = #tpu.dot_dimension_numbers<[1], [0], [0], [1], [0, 0, 1, 1], [], []>} : vector<8x32xf32>, vector<32x64xf32>, vector<8x64xf32> -> vector<8x64xf32>
    %137 = arith.addf %132, %136 : vector<8x64xf32>
    %c5 = arith.constant 5 : index
    %c0_72 = arith.constant 0 : index
    %138 = vector.load %arg10[%c5, %c0_72] : memref<16x32xf32, #tpu.memory_space<vmem>>, vector<8x32xf32>
    %c5_73 = arith.constant 5 : index
    %c0_74 = arith.constant 0 : index
    %c0_75 = arith.constant 0 : index
    %139 = vector.load %arg6[%c5_73, %c0_74, %c0_75] : memref<9x32x64xf32, #tpu.memory_space<vmem>>, vector<1x32x64xf32>
    %140 = vector.shape_cast %139 : vector<1x32x64xf32> to vector<32x64xf32>
    %cst_76 = arith.constant dense<0.000000e+00> : vector<8x64xf32>
    %141 = tpu.matmul %138, %140, %cst_76 {dimension_numbers = #tpu.dot_dimension_numbers<[1], [0], [0], [1], [0, 0, 1, 1], [], []>} : vector<8x32xf32>, vector<32x64xf32>, vector<8x64xf32> -> vector<8x64xf32>
    %142 = arith.addf %137, %141 : vector<8x64xf32>
    %c6 = arith.constant 6 : index
    %c0_77 = arith.constant 0 : index
    %143 = vector.load %arg10[%c6, %c0_77] : memref<16x32xf32, #tpu.memory_space<vmem>>, vector<8x32xf32>
    %c6_78 = arith.constant 6 : index
    %c0_79 = arith.constant 0 : index
    %c0_80 = arith.constant 0 : index
    %144 = vector.load %arg6[%c6_78, %c0_79, %c0_80] : memref<9x32x64xf32, #tpu.memory_space<vmem>>, vector<1x32x64xf32>
    %145 = vector.shape_cast %144 : vector<1x32x64xf32> to vector<32x64xf32>
    %cst_81 = arith.constant dense<0.000000e+00> : vector<8x64xf32>
    %146 = tpu.matmul %143, %145, %cst_81 {dimension_numbers = #tpu.dot_dimension_numbers<[1], [0], [0], [1], [0, 0, 1, 1], [], []>} : vector<8x32xf32>, vector<32x64xf32>, vector<8x64xf32> -> vector<8x64xf32>
    %147 = arith.addf %142, %146 : vector<8x64xf32>
    %c7 = arith.constant 7 : index
    %c0_82 = arith.constant 0 : index
    %148 = vector.load %arg10[%c7, %c0_82] : memref<16x32xf32, #tpu.memory_space<vmem>>, vector<8x32xf32>
    %c7_83 = arith.constant 7 : index
    %c0_84 = arith.constant 0 : index
    %c0_85 = arith.constant 0 : index
    %149 = vector.load %arg6[%c7_83, %c0_84, %c0_85] : memref<9x32x64xf32, #tpu.memory_space<vmem>>, vector<1x32x64xf32>
    %150 = vector.shape_cast %149 : vector<1x32x64xf32> to vector<32x64xf32>
    %cst_86 = arith.constant dense<0.000000e+00> : vector<8x64xf32>
    %151 = tpu.matmul %148, %150, %cst_86 {dimension_numbers = #tpu.dot_dimension_numbers<[1], [0], [0], [1], [0, 0, 1, 1], [], []>} : vector<8x32xf32>, vector<32x64xf32>, vector<8x64xf32> -> vector<8x64xf32>
    %152 = arith.addf %147, %151 : vector<8x64xf32>
    %c8 = arith.constant 8 : index
    %c0_87 = arith.constant 0 : index
    %153 = vector.load %arg10[%c8, %c0_87] : memref<16x32xf32, #tpu.memory_space<vmem>>, vector<8x32xf32>
    %c8_88 = arith.constant 8 : index
    %c0_89 = arith.constant 0 : index
    %c0_90 = arith.constant 0 : index
    %154 = vector.load %arg6[%c8_88, %c0_89, %c0_90] : memref<9x32x64xf32, #tpu.memory_space<vmem>>, vector<1x32x64xf32>
    %155 = vector.shape_cast %154 : vector<1x32x64xf32> to vector<32x64xf32>
    %cst_91 = arith.constant dense<0.000000e+00> : vector<8x64xf32>
    %156 = tpu.matmul %153, %155, %cst_91 {dimension_numbers = #tpu.dot_dimension_numbers<[1], [0], [0], [1], [0, 0, 1, 1], [], []>} : vector<8x32xf32>, vector<32x64xf32>, vector<8x64xf32> -> vector<8x64xf32>
    %157 = arith.addf %152, %156 : vector<8x64xf32>
    %cst_92 = arith.constant 0.000000e+00 : f32
    %158 = vector.broadcast %cst_92 : f32 to vector<8x64xf32>
    %159 = arith.maximumf %157, %158 : vector<8x64xf32>
    %c0_93 = arith.constant 0 : index
    %c0_94 = arith.constant 0 : index
    %160 = vector.load %arg7[%c0_93, %c0_94] : memref<64x32xf32, #tpu.memory_space<vmem>>, vector<64x32xf32>
    %cst_95 = arith.constant dense<0.000000e+00> : vector<8x32xf32>
    %161 = tpu.matmul %159, %160, %cst_95 {dimension_numbers = #tpu.dot_dimension_numbers<[1], [0], [0], [1], [0, 0, 1, 1], [], []>} : vector<8x64xf32>, vector<64x32xf32>, vector<8x32xf32> -> vector<8x32xf32>
    %162 = vector.broadcast %10 : vector<1x32xf32> to vector<8x32xf32>
    %163 = arith.addf %161, %162 : vector<8x32xf32>
    %164 = arith.addf %163, %106 : vector<8x32xf32>
    %cst_96 = arith.constant dense<0.000000e+00> : vector<8xf32>
    %165 = vector.multi_reduction <add>, %164, %cst_96 [1] : vector<8x32xf32> to vector<8xf32>
    %166 = vector.shape_cast %165 : vector<8xf32> to vector<8x1xf32>
    %cst_97 = arith.constant 3.200000e+01 : f32
    %167 = vector.broadcast %cst_97 : f32 to vector<8x1xf32>
    %168 = arith.divf %166, %167 : vector<8x1xf32>
    %169 = vector.broadcast %168 : vector<8x1xf32> to vector<8x32xf32>
    %170 = arith.subf %164, %169 : vector<8x32xf32>
    %171 = arith.mulf %170, %170 : vector<8x32xf32>
    %cst_98 = arith.constant dense<0.000000e+00> : vector<8xf32>
    %172 = vector.multi_reduction <add>, %171, %cst_98 [1] : vector<8x32xf32> to vector<8xf32>
    %173 = vector.shape_cast %172 : vector<8xf32> to vector<8x1xf32>
    %cst_99 = arith.constant 3.200000e+01 : f32
    %174 = vector.broadcast %cst_99 : f32 to vector<8x1xf32>
    %175 = arith.divf %173, %174 : vector<8x1xf32>
    %176 = vector.broadcast %168 : vector<8x1xf32> to vector<8x32xf32>
    %177 = arith.subf %164, %176 : vector<8x32xf32>
    %cst_100 = arith.constant 9.99999974E-6 : f32
    %178 = vector.broadcast %cst_100 : f32 to vector<8x1xf32>
    %179 = arith.addf %175, %178 : vector<8x1xf32>
    %180 = math.rsqrt %179 : vector<8x1xf32>
    %181 = vector.broadcast %180 : vector<8x1xf32> to vector<8x32xf32>
    %182 = arith.mulf %177, %181 : vector<8x32xf32>
    %183 = vector.broadcast %11 : vector<1x32xf32> to vector<8x32xf32>
    %184 = arith.mulf %182, %183 : vector<8x32xf32>
    %185 = vector.broadcast %12 : vector<1x32xf32> to vector<8x32xf32>
    %186 = arith.addf %184, %185 : vector<8x32xf32>
    %187 = vector.broadcast %18 : vector<8x1xf32> to vector<8x32xf32>
    %188 = arith.mulf %186, %187 : vector<8x32xf32>
    %c0_101 = arith.constant 0 : index
    %c0_102 = arith.constant 0 : index
    %c0_103 = arith.constant 0 : index
    %189 = vector.load %arg8[%c0_101, %c0_102, %c0_103] : memref<1x8x32xf32, #tpu.memory_space<vmem>>, vector<1x8x32xf32>
    %190 = vector.shape_cast %189 : vector<1x8x32xf32> to vector<8x32xf32>
    %191 = vector.shape_cast %188 : vector<8x32xf32> to vector<1x8x32xf32>
    tpu.vector_store %arg8[%c0_101, %c0_102, %c0_103], %191 {strides = array<i32>} : memref<1x8x32xf32, #tpu.memory_space<vmem>>, vector<1x8x32xf32>,
    return
  }
  func.func @transform_0(%arg0: i32, %arg1: memref<2xi32, #tpu.memory_space<smem>>) -> (i32, i32, i32) {
    %c0_i32 = arith.constant 0 : i32
    %c0_i32_0 = arith.constant 0 : i32
    %c0_i32_1 = arith.constant 0 : i32
    return %arg0, %c0_i32, %c0_i32_0 : i32, i32, i32
  }
  func.func @transform_1(%arg0: i32, %arg1: memref<2xi32, #tpu.memory_space<smem>>) -> (i32, i32) {
    %c0_i32 = arith.constant 0 : i32
    %c0_i32_0 = arith.constant 0 : i32
    %c0_i32_1 = arith.constant 0 : i32
    return %c0_i32, %c0_i32_0 : i32, i32
  }
  func.func @transform_2(%arg0: i32, %arg1: memref<2xi32, #tpu.memory_space<smem>>) -> (i32, i32) {
    %c0_i32 = arith.constant 0 : i32
    %c0_i32_0 = arith.constant 0 : i32
    %c0_i32_1 = arith.constant 0 : i32
    return %c0_i32, %c0_i32_0 : i32, i32
  }
  func.func @transform_3(%arg0: i32, %arg1: memref<2xi32, #tpu.memory_space<smem>>) -> (i32, i32, i32) {
    %c0_i32 = arith.constant 0 : i32
    %c0_i32_0 = arith.constant 0 : i32
    %c0_i32_1 = arith.constant 0 : i32
    %c0_i32_2 = arith.constant 0 : i32
    return %c0_i32, %c0_i32_0, %c0_i32_1 : i32, i32, i32
  }
  func.func @transform_4(%arg0: i32, %arg1: memref<2xi32, #tpu.memory_space<smem>>) -> (i32, i32, i32) {
    %c0_i32 = arith.constant 0 : i32
    %c0_i32_0 = arith.constant 0 : i32
    %c0_i32_1 = arith.constant 0 : i32
    %c0_i32_2 = arith.constant 0 : i32
    return %c0_i32, %c0_i32_0, %c0_i32_1 : i32, i32, i32
  }
  func.func @transform_5(%arg0: i32, %arg1: memref<2xi32, #tpu.memory_space<smem>>) -> (i32, i32) {
    %c0_i32 = arith.constant 0 : i32
    %c0_i32_0 = arith.constant 0 : i32
    %c0_i32_1 = arith.constant 0 : i32
    return %c0_i32, %c0_i32_0 : i32, i32
  }
  func.func @transform_6(%arg0: i32, %arg1: memref<2xi32, #tpu.memory_space<smem>>) -> (i32, i32, i32) {
    %c0_i32 = arith.constant 0 : i32
    %c0_i32_0 = arith.constant 0 : i32
    %c0_i32_1 = arith.constant 0 : i32
    return %arg0, %c0_i32, %c0_i32_0 : i32, i32, i32
  }
  func.func @transform_7(%arg0: i32, %arg1: memref<2xi32, #tpu.memory_space<smem>>) -> (i32, i32, i32, i32) {
    %c0_i32 = arith.constant 0 : i32
    %c0_i32_0 = arith.constant 0 : i32
    %c0_i32_1 = arith.constant 0 : i32
    %c0_i32_2 = arith.constant 0 : i32
    return %c0_i32, %arg0, %c0_i32_0, %c0_i32_1 : i32, i32, i32, i32
  }
}

</mosaic_0001>

<bundles_post_ra>
// kernel: fft_block.1
= control target key start
LH: loop header
LB: loop body
LE: loop exit
PB: predicated region body
PF: predicated region fallthrough
CT: control target
= control target key end

     0   :  { %s1322_s30 = smov [#allocation4]   ;;  %s1622_s0 = inlined_call_operand.vmem [shape: s32[2], index: 0, kind: input, shape index: {}]   ;;  %s1623_s1 = inlined_call_operand.vmem [shape: f32[2,8,32], index: 1, kind: input, shape index: {}]   ;;  %s1624_s2 = inlined_call_operand.vmem [shape: f32[32,96], index: 2, kind: input, shape index: {}]   ;;  %s1625_s3 = inlined_call_operand.vmem [shape: f32[8,96], index: 3, kind: input, shape index: {}]   ;;  %s1626_s4 = inlined_call_operand.vmem [shape: f32[2,16,32], index: 4, kind: input, shape index: {}]   ;;  %s1627_s5 = inlined_call_operand.hbm [shape: f32[9,32,64], index: 5, kind: input, shape index: {}]   ;;  %s1628_s6 = inlined_call_operand.vmem [shape: f32[64,32], index: 6, kind: input, shape index: {}]   ;;  %s1629_s7 = inlined_call_operand.hbm [shape: f32[2,8,32], index: 7, kind: output, shape index: {0}]   ;;  %s1630_s8 = inlined_call_operand.hbm [shape: f32[2,2,8,8], index: 8, kind: output, shape index: {1}]  }
   0x1   :  { %1631 = sst [smem:[#allocation15_spill]] %s1623_s1  ;;  %s15_s29 = sshll.u32 %s1622_s0, 4  ;;  %s16_s29 = int_to_ptr.vmem [resolvable:$true] %s15_s29 }
   0x2   :  { %1632 = sst [smem:[#allocation16_spill]] %s1624_s2 }
   0x3   :  { %18 = dma.vmem_to_smem %s16_s29, 16, %s1322_s30, [#allocation3] }
   0x4   :  { %1292 = dma.done.wait [#allocation3], 16 }
   0x5   :  { %1293 = vsyncadd [#allocation3], 4294967280 }
   0x6   :  { %21 = sfence }
   0x7   :  { %22 = vsyncpa [#allocation6], 0 }
   0x8   :  { %23 = vsyncpa [#allocation7], 0 }
   0x9   :  { %25 = vsyncpa [#allocation7 + $0x1], 0 }
   0xa   :  { %26 = vsyncpa [#allocation10], 0 }
   0xb   :  { %28 = vsyncpa [#allocation10 + $0x1], 0  ;;  %s1384_s9 = smov 0   ;;  %s1386_s10 = smov 0  }
   0xc   :  { %s1388_s11 = smov 0   ;;  %s1390_s12 = smov 0  }
   0xd LB: > { %s1405_s0 = sadd.s32 4294967295, %s1320_s12   ;;  %s1058_s13 = sadd.s32 4294967294, %s1320_s12   ;;  %s1320_s12 = sphi %s1390_s12, %s1640_s12   ;;  %s1316_s11 = sphi %s1388_s11, %s1639_s11   ;;  %s1312_s10 = sphi %s1386_s10, %s1638_s10   ;;  %s1308_s9 = sphi %s1384_s9, %s1637_s9  }
   0xe   : > { %s1409_s14 = sadd.s32 1, %s1320_s12   ;;  %s172_s15 = sadd.s32 1, %s1316_s11 }
   0xf   : > { %s169_s16 = ssub.s32 %s1320_s12, %s1409_s14  ;;  %p182_p0 = scmp.ne.s32.totalorder %s1316_s11, %s1312_s10 }
  0x10   : > { %p170_p1 = scmp.eq.s32.totalorder %s169_s16, 0  ;;  %p183_p2 = scmp.eq.s32.totalorder %s1405_s0, 1 }
  0x11   : > { %p188_p3 = scmp.ne.s32.totalorder %s1312_s10, %s1308_s9  ;;  %p189_p4 = scmp.eq.s32.totalorder %s1058_s13, 1 }
  0x12   : > { %s1420_s17 = scalar_select %p170_p1, %s1316_s11, %s172_s15  }
  0x13   : > { %p1422_p5 = por %p183_p2, %p182_p0  ;;  %p1426_p6 = por %p189_p4, %p188_p3 }
  0x14   : > { %p1059_p7 = scmp.ge.s32.totalorder %s1320_s12, 1  ;;  %p222_p8 = scmp.lt.s32.totalorder %s1320_s12, 3 }
  0x15   : > { %p1115_p9 = scmp.eq.s32.totalorder %s1405_s0, 0  ;;  %s242_s22 = sshll.u32 %s1627_s5, 4  ;;  %s243_s22 = int_to_ptr.hbm [resolvable:$true] %s242_s22 }
  0x16   : > { %p223_p10 = pnand %p1059_p7, %p222_p8  ;;  %s1323_s23 = smov [#allocation5]  }
  0x17   : > { %s244_s24 = sshll.u32 %s1323_s23, 4  ;;  %s1324_s25 = smov 128   ;;  %s245_s24 = int_to_ptr.vmem [resolvable:$true] %s244_s24 }
  0x18   : > { %p1104_p11 = pneg %p223_p10  ;;  %s1325_s26 = smov 8  }
  0x19   : > { %270 = sbr.rel (%p223_p10) target bundleno = 1788 (0x6fc), region = 44 }
  0x1a   : > { %p1105_p12 = pnand %p1115_p9, %p1104_p11 }
  0x1c   : > { %1107 = dma.hbm_to_vmem [thread:$0]  (!%p1105_p12), %s243_s22, 4608, %s245_s24, [#allocation6], %s1324_s25, %s1324_s25, %s1325_s26  }
  0x1e   : > { %1295 = dma.done.wait (%p1115_p9), [#allocation6], 4608  }
  0x1f   : > { %1297 = vsyncadd (%p1115_p9), [#allocation6], 4294962688  ;;  %p307_p13 = scmp.lt.s32.totalorder %s1405_s0, 1  ;;  %s1635_s2 = sld [smem:[#allocation16_spill]]  ;;  %vm328_vm0 = vcmask 261120   ;;  %v1466_v5 = vld [vmem:[%s1625_s3] sm:$0xff]  ;;  %v314_v14 = vlaneseq }
  0x20   : > { %s1636_s1 = sld [smem:[#allocation15_spill]]  ;;  %v327_v6 = vperm.slane %v1466_v5, 0  ;;  %s1327_s29 = smov 96   ;;  %vm355_vm1 = vcmask 130048   ;;  %vm581_vm2 = vcmask 257024   ;;  %v1331_v17 = vmov 0.0  }
  0x21   : > { %s308_s27 = scalar_select %p307_p13, %s1405_s0, 1  ;;  %v315_v15 = vshrl.u32 %v314_v14, 7  ;;  %582 = vst.msk [vmem:[#allocation2] sm:$0xf] %vm581_vm2, %v1331_v17  ;;  %v317_v19 = vand.u32 127, %v314_v14  ;;  %vm384_vm5 = vcmask 64512  }
  0x22   : > { %s1328_s30 = smov 80   ;;  %s1329_s13 = smov 64   ;;  %583 = vst.msk [vmem:[#allocation2 + $0xc] sm:$0xf] %vm581_vm2, %v1331_v17  ;;  %v424_v38 = vld [vmem:[%s1626_s4 + $0x8] sm:$0xff]  ;;  %v423_v39 = vld [vmem:[%s1626_s4] sm:$0xff] }
  0x23   : > { %s1066_s28 = sshll.u32 %s308_s27, 3  ;;  %s1330_s15 = smov 48   ;;  %v1078_v46 = vld [vmem:[%s1626_s4 + $0x18] sm:$0xff]  ;;  %v1077_v47 = vld [vmem:[%s1626_s4 + $0x10] sm:$0xff]  ;;  %v448_v51 = vperm.slane %v1466_v5, 2  ;;  %v1332_v57 = vmov 32.0  }
  0x24   : > { %s311_s16 = sld [smem:[#allocation4 + %s1405_s0]]  ;;  %s1487_s24 = sand.u32 1, %s1312_s10   ;;  %v648_v14 = vld [vmem:[#allocation5 + $0x50] sm:$0xff]  ;;  %vm864_vm10 = vcmask 523264  }
  0x25   : > { %v326_v0 = vld [vmem:[%s1635_s2 + $0x18] sm:$0xff]  ;;  %v325_v1 = vld [vmem:[%s1635_s2 + $0x10] sm:$0xff]  ;;  %v324_v2 = vld [vmem:[%s1635_s2 + $0x8] sm:$0xff]  ;;  %s1065_s25 = sshll.u32 %s1487_s24, 4  ;;  %s1092_s21 = sshll.u32 %s1405_s0, 3 }
  0x26   : > { %344 = vmatpush.msra.mxu0 %v326_v0  ;;  %s310_s23 = scalar_lea.vmem %s1636_s1, %s1066_s28  ;;  %v323_v3 = vld [vmem:[%s1635_s2] sm:$0xff]  ;;  %s1326_s28 = smov 112  }
  0x27   : > { %v1459_v4 = vld [vmem:[%s310_s23] sm:$0xff]  ;;  %s1491_s26 = scalar_lea.vmem [#allocation9], %s1065_s25  ;;  %s947_s25 = scalar_lea.hbm %s1630_s8, %s1092_s21 }
  0x28   : > { %345 = vmatpush.msra.mxu0 %v325_v1  ;;  %s948_s27 = sshll.u32 %s1491_s26, 4  ;;  %s1240_s20 = scalar_lea.hbm %s1630_s8, 32  ;;  %s949_s27 = int_to_ptr.vmem [resolvable:$true] %s948_s27 }
  0x2a   : > { %346 = vmatpush.msra.mxu0 %v324_v2  ;;  %v318_v16 = vstv %s311_s16 }
  0x2b   : > { %vm319_vm3 = vcmp.lt.s32.totalorder %v315_v15, %v318_v16  ;;  %vm322_vm4 = vcmp.ge.s32.totalorder %v317_v19, %v318_v16  ;;  %v678_v15 = vld [vmem:[#allocation5 + $0x70] sm:$0xff]  ;;  %v617_v16 = vld [vmem:[#allocation5 + $0x28] sm:$0xff] }
  0x2c   : > { %347 = vmatpush.msra.mxu0 %v323_v3  ;;  %v1474_v18 = vsel %vm319_vm3, 1.0, %v1331_v17  ;;  %v587_v17 = vld [vmem:[#allocation5 + $0x8] sm:$0xff] }
  0x2d   : > { %1068 = vmatmul.msk.f32.vlgmr.msra.gmra.mxu0 %vm328_vm0, %v1459_v4  ;;  %v647_v19 = vld [vmem:[#allocation5 + $0x48] sm:$0xff] }
  0xaa   : > { %v349_v7 = vpop.f32.mrf.mxu0 }
  0xab   : > { %v350_v8 = vadd.f32 %v349_v7, %v327_v6  ;;  %v619_v6 = vld [vmem:[#allocation5 + $0x38] sm:$0xff] }
  0xac   : > { %v589_v7 = vld [vmem:[#allocation5 + $0x18] sm:$0xff] }
  0xad   : > { %450 = vrot.lane.b32.xlu1 %v350_v8, %s1326_s28  ;;  %353 = vrot.lane.b32.xlu0 %v350_v8, %s1327_s29  ;;  %s950_s28 = sshll.u32 %s947_s25, 4  ;;  %s923_s29 = scalar_lea.sflag [#allocation10], %s1487_s24  ;;  %s951_s28 = int_to_ptr.hbm [resolvable:$true] %s950_s28 }
  0xae   : > { %606 = vmatpush.msrb.mxu0 %v589_v7  ;;  %v861_v7 = vld [vmem:[%s1628_s6 + $0x30] sm:$0xff] }
  0xb5   : > { %452 = vrot.lane.b32.xlu0 %v350_v8, %s1328_s30  ;;  %s1234_s30 = sshra.s32 %s951_s28, 4  ;;  %s1235_s30 = int_to_ptr.hbm [resolvable:$true] %s1234_s30 }
  0xb6   : > { %p1241_p3 = scmp.lt.s32.totalorder %s1235_s30, %s1630_s8 }
  0xbd   : > { %397 = vrot.lane.b32.xlu0 %v350_v8, %s1329_s13  ;;  %s1236_s13 = scalar_lea.hbm %s1235_s30, 16 }
  0xbe   : > { %p1237_p0 = scmp.ne.s32.totalorder %s1235_s30, %s1236_s13  ;;  %p1242_p4 = scmp.lt.s32.totalorder %s1240_s20, %s1236_s13 }
  0xc0   : > { %p1238_p1 = pnand %p1237_p0, %p1422_p5  ;;  %p1243_p7 = por %p1242_p4, %p1241_p3 }
  0xc2   : > { %p1239_p2 = pneg %p1238_p1 }
  0xc4   : > { %p1244_p8 = pnand %p1243_p7, %p1239_p2 }
  0xc5   : > { %493 = vrot.lane.b32.xlu0 %v350_v8, %s1330_s15 }
 0x11f   : > { %v354_v9 = vpop.permute.xlu0 %353  ;;  %v451_v11 = vpop.permute.xlu1 %450 }
 0x120   : > { %1069 = vmatpush.xpose.msk.msra.mxu1 %vm355_vm1, %v354_v9 }
 0x123   : > { %1070 = vmatmul.msk.f32.vlgmr.msra.gmra.mxu1 %vm355_vm1, %v350_v8  ;;  %v649_v8 = vld [vmem:[#allocation5 + $0x58] sm:$0xff] }
 0x127   : > { %v453_v10 = vpop.permute.xlu0 %452 }
 0x128   : > { %1073 = vmatpush.xpose.msk.msra.mxu2 %vm355_vm1, %v453_v10  ;;  %v679_v10 = vld [vmem:[#allocation5 + $0x78] sm:$0xff] }
 0x12b   : > { %1074 = vmatmul.msk.f32.vlgmr.msra.gmra.mxu2 %vm355_vm1, %v451_v11  ;;  %v618_v11 = vld [vmem:[#allocation5 + $0x30] sm:$0xff] }
 0x12c   : > { %635 = vmatpush.msrb.mxu2 %v619_v6  ;;  %v862_v6 = vld [vmem:[%s1628_s6 + $0x38] sm:$0xff] }
 0x12e   : > { %636 = vmatpush.msrb.mxu2 %v618_v11  ;;  %v857_v11 = vld [vmem:[%s1628_s6 + $0x10] sm:$0xff] }
 0x12f   : > { %v398_v12 = vpop.permute.xlu0 %397 }
 0x130   : > { %418 = vmatpush.msra.mxu3 %v398_v12  ;;  %v588_v12 = vld [vmem:[#allocation5 + $0x10] sm:$0xff]  ;;  %637 = vmatpush.msrb.mxu2 %v617_v16 }
 0x131   : > { %607 = vmatpush.msrb.mxu0 %v588_v12  ;;  %v856_v12 = vld [vmem:[%s1628_s6 + $0x8] sm:$0xff] }
 0x132   : > { %442 = vmatpush.msrb.mxu3 %v424_v38  ;;  %v797_v38 = vld [vmem:[#allocation5 + $0xe8] sm:$0xff] }
 0x133   : > { %608 = vmatpush.msrb.mxu0 %v587_v17 }
 0x134   : > { %443 = vmatpush.msrb.mxu3 %v423_v39 }
 0x137   : > { %v494_v13 = vpop.permute.xlu0 %493 }
 0x138   : > { %514 = vmatpush.msrb.mxu1 %v494_v13 }
 0x13a   : > { %665 = vmatpush.msra.mxu1 %v649_v8  ;;  %v860_v8 = vld [vmem:[%s1628_s6 + $0x28] sm:$0xff] }
 0x13c   : > { %666 = vmatpush.msra.mxu1 %v648_v14 }
 0x13e   : > { %667 = vmatpush.msra.mxu1 %v647_v19 }
 0x1a0   : > { %v377_v20 = vpop.f32.mrf.mxu1 }
 0x1a1   : > { %v380_v21 = vmul.f32 0.25, %v377_v20  ;;  %v677_v20 = vld [vmem:[#allocation5 + $0x68] sm:$0xff] }
 0x1a3   : > { %v383_v22 = vsel %vm322_vm4, -1e+09, %v380_v21 }
 0x1a4   : > { %v385_v23 = vsel %vm384_vm5, %v383_v22, -inf }
 0x1a5   : > { %386 = vmax.xlane.f32.xlu1 %v385_v23  ;;  %v586_v23 = vld [vmem:[#allocation5] sm:$0xff] }
 0x1a6   : > { %609 = vmatpush.msrb.mxu0 %v586_v23 }
 0x1ae   : > { %v475_v24 = vpop.f32.mrf.mxu2 }
 0x1af   : > { %v478_v25 = vmul.f32 0.25, %v475_v24  ;;  %v646_v24 = vld [vmem:[#allocation5 + $0x40] sm:$0xff] }
 0x1b0   : > { %668 = vmatpush.msra.mxu1 %v646_v24 }
 0x1b1   : > { %v479_v26 = vsel %vm322_vm4, -1e+09, %v478_v25  ;;  %v676_v25 = vld [vmem:[#allocation5 + $0x60] sm:$0xff] }
 0x1b2   : > { %v480_v27 = vsel %vm384_vm5, %v479_v26, -inf }
 0x1b3   : > { %481 = vmax.xlane.f32.xlu2 %v480_v27  ;;  %v709_v27 = vld [vmem:[#allocation5 + $0x98] sm:$0xff] }
 0x1b4   : > { %725 = vmatpush.msra.mxu0 %v709_v27 }
 0x218   : > { %v387_v28 = vpop.xlane.xlu1 %386 }
 0x219   : > { %v388_v29 = vsub.f32 %v383_v22, %v387_v28  ;;  %v616_v22 = vld [vmem:[#allocation5 + $0x20] sm:$0xff]  ;;  %v769_v28 = vld [vmem:[#allocation5 + $0xd8] sm:$0xff] }
 0x21a   : > { %638 = vmatpush.msrb.mxu2 %v616_v22 }
 0x21b   : > { %v389_v30 = vmul.f32 1.442695, %v388_v29  ;;  %v799_v29 = vld [vmem:[#allocation5 + $0xf8] sm:$0xff] }
 0x21d   : > { %1164 = vpow2.f32 %v389_v30  ;;  %v738_v30 = vld [vmem:[#allocation5 + $0xb0] sm:$0xff] }
 0x223   : > { %v1165_v31 = vpop.eup %1164 }
 0x224   : > { %v391_v32 = vsel %vm384_vm5, %v1165_v31, 0.0 }
 0x225   : > { %392 = vadd.xlane.f32.xlu2 %v391_v32  ;;  %v768_v32 = vld [vmem:[#allocation5 + $0xd0] sm:$0xff] }
 0x226   : > { %v482_v33 = vpop.xlane.xlu2 %481 }
 0x227   : > { %v483_v34 = vsub.f32 %v479_v26, %v482_v33  ;;  %v739_v26 = vld [vmem:[#allocation5 + $0xb8] sm:$0xff]  ;;  %v798_v33 = vld [vmem:[#allocation5 + $0xf0] sm:$0xff] }
 0x228   : > { %755 = vmatpush.msra.mxu2 %v739_v26 }
 0x229   : > { %v484_v35 = vmul.f32 1.442695, %v483_v34  ;;  %v737_v34 = vld [vmem:[#allocation5 + $0xa8] sm:$0xff] }
 0x22a   : > { %756 = vmatpush.msra.mxu2 %v738_v30 }
 0x22b   : > { %1166 = vpow2.f32 %v484_v35 }
 0x22c   : > { %757 = vmatpush.msra.mxu2 %v737_v34 }
 0x231   : > { %v1167_v36 = vpop.eup %1166 }
 0x232   : > { %v486_v37 = vsel %vm384_vm5, %v1167_v36, 0.0 }
 0x233   : > { %487 = vadd.xlane.f32.xlu2 %v486_v37  ;;  %v767_v37 = vld [vmem:[#allocation5 + $0xc8] sm:$0xff] }
 0x298   : > { %v393_v40 = vpop.xlane.xlu2 %392 }
 0x299   : > { %1168 = vrcp.f32 %v393_v40  ;;  %v736_v40 = vld [vmem:[#allocation5 + $0xa0] sm:$0xff] }
 0x29a   : > { %758 = vmatpush.msra.mxu2 %v736_v40 }
 0x29f   : > { %v1169_v41 = vpop.eup %1168 }
 0x2a0   : > { %v395_v42 = vmul.f32 %v1169_v41, %v1165_v31  ;;  %v708_v31 = vld [vmem:[#allocation5 + $0x90] sm:$0xff]  ;;  %v706_v41 = vld [vmem:[#allocation5 + $0x80] sm:$0xff] }
 0x2a1   : > { %726 = vmatpush.msra.mxu0 %v708_v31 }
 0x2a2   : > { %1071 = vmatmul.msk.f32.vlgmr.msra.gmra.mxu3 %vm384_vm5, %v395_v42  ;;  %396 = vst.msk [vmem:[%s1491_s26] sm:$0xff] %vm384_vm5, %v395_v42  ;;  %v766_v42 = vld [vmem:[#allocation5 + $0xc0] sm:$0xff] }
 0x2a3   : > { %539 = vmatpush.msra.mxu3 %v1078_v46 }
 0x2a5   : > { %540 = vmatpush.msra.mxu3 %v1077_v47 }
 0x2a6   : > { %v488_v43 = vpop.xlane.xlu2 %487 }
 0x2a7   : > { %1170 = vrcp.f32 %v488_v43  ;;  %v796_v43 = vld [vmem:[#allocation5 + $0xe0] sm:$0xff] }
 0x2a8   : > { %1172 = vrcp.f32 %v1332_v57 }
 0x2ad   : > { %v1171_v44 = vpop.eup %1170 }
 0x2ae   : > { %v490_v45 = vmul.f32 %v1171_v44, %v1167_v36  ;;  %v1173_v58 = vpop.eup %1172  ;;  %v707_v36 = vld [vmem:[#allocation5 + $0x88] sm:$0xff] }
 0x2af   : > { %v551_v59 = vmul.f32 32.0, %v1173_v58  ;;  %vm555_vm6 = vweird.f32 %v1173_v58  ;;  %727 = vmatpush.msra.mxu0 %v707_v36 }
 0x2b0   : > { %1076 = vmatmul.msk.f32.vlgmr.msrb.gmra.mxu1 %vm384_vm5, %v490_v45  ;;  %1075 = vst.msk [vmem:[%s1491_s26 + $0x8] sm:$0xff] %vm384_vm5, %v490_v45 }
 0x2b1   : > { %v552_v60 = vsub.f32 1.0, %v551_v59  ;;  %785 = vmatpush.msrb.mxu1 %v769_v28  ;;  %728 = vmatpush.msra.mxu0 %v706_v41 }
 0x2b3   : > { %v553_v61 = vmul.f32 %v1173_v58, %v552_v60  ;;  %786 = vmatpush.msrb.mxu1 %v768_v32  ;;  %v828_v60 = vld [vmem:[#allocation5 + $0x110] sm:$0xff] }
 0x2b5   : > { %v554_v62 = vadd.f32 %v1173_v58, %v553_v61  ;;  %787 = vmatpush.msrb.mxu1 %v767_v37  ;;  %v827_v61 = vld [vmem:[#allocation5 + $0x108] sm:$0xff] }
 0x2b7   : > { %v1509_v63 = vsel %vm555_vm6, %v1173_v58, %v554_v62  ;;  %788 = vmatpush.msrb.mxu1 %v766_v42 }
 0x325   : > { %v420_v48 = vpop.f32.mrf.mxu3 }
 0x326   : > { %1072 = vmatmul.msk.f32.vlgmr.msrb.gmra.mxu3 %vm355_vm1, %v420_v48  ;;  %v576_v48 = vperm.slane %v1466_v5, 3 }
 0x327   : > { %695 = vmatpush.msrb.mxu3 %v679_v10  ;;  %v858_v10 = vld [vmem:[%s1628_s6 + $0x18] sm:$0xff] }
 0x329   : > { %696 = vmatpush.msrb.mxu3 %v678_v15  ;;  %v590_v15 = vperm.slane %v1466_v5, 1 }
 0x32b   : > { %697 = vmatpush.msrb.mxu3 %v677_v20 }
 0x32d   : > { %v516_v49 = vpop.f32.mrf.mxu1  ;;  %698 = vmatpush.msrb.mxu3 %v676_v25 }
 0x32e   : > { %1079 = vmatmul.msk.f32.vlgmr.msra.gmra.mxu3 %vm355_vm1, %v516_v49 }
 0x32f   : > { %815 = vmatpush.msra.mxu3 %v799_v29 }
 0x331   : > { %816 = vmatpush.msra.mxu3 %v798_v33 }
 0x333   : > { %817 = vmatpush.msra.mxu3 %v797_v38 }
 0x335   : > { %818 = vmatpush.msra.mxu3 %v796_v43 }
 0x3a9   : > { %v445_v50 = vpop.f32.mrf.mxu3 }
 0x3aa   : > { %v449_v52 = vadd.f32 %v448_v51, %v445_v50  ;;  %v578_v50 = vperm.slane %v1466_v5, 4 }
 0x3b1   : > { %v542_v53 = vpop.f32.mrf.mxu3 }
 0x3b2   : > { %v545_v54 = vadd.f32 %v542_v53, %v449_v52 }
 0x3b4   : > { %v546_v55 = vadd.f32 %v545_v54, %v1459_v4 }
 0x3b6   : > { %v547_v56 = vsel %vm328_vm0, %v546_v55, 0.0 }
 0x3b7   : > { %548 = vadd.xlane.f32.xlu2 %v547_v56 }
 0x42a   : > { %v549_v0 = vpop.xlane.xlu2 %548 }
 0x42b   : > { %v557_v1 = vmul.f32 %v1509_v63, %v549_v0 }
 0x42d   : > { %v1512_v2 = vsub.f32 %v546_v55, %v557_v1  ;;  %v829_v55 = vld [vmem:[#allocation5 + $0x118] sm:$0xff]  ;;  %v826_v1 = vld [vmem:[#allocation5 + $0x100] sm:$0xff] }
 0x42f   : > { %v559_v3 = vmul.f32 %v1512_v2, %v1512_v2 }
 0x431   : > { %v560_v4 = vsel %vm328_vm0, %v559_v3, 0.0 }
 0x432   : > { %561 = vadd.xlane.f32.xlu0 %v560_v4 }
 0x4a5   : > { %v562_v9 = vpop.xlane.xlu0 %561 }
 0x4a6   : > { %v563_v13 = vmul.f32 %v562_v9, %v1509_v63  ;;  %v859_v9 = vld [vmem:[%s1628_s6 + $0x20] sm:$0xff] }
 0x4a8   : > { %v564_v21 = vadd.f32 1e-05, %v563_v13  ;;  %v855_v13 = vld [vmem:[%s1628_s6] sm:$0xff] }
 0x4aa   : > { %1174 = vrsqrt.f32 %v564_v21  ;;  %vm571_vm8 = vweird.f32 %v564_v21 }
 0x4b0   : > { %v1175_v35 = vpop.eup %1174 }
 0x4b1   : > { %v566_v39 = vmul.f32 %v1175_v35, %v564_v21  ;;  %vm572_vm7 = vweird.f32 %v1175_v35 }
 0x4b2   : > { %vm573_vm9 = vmor %vm571_vm8, %vm572_vm7 }
 0x4b3   : > { %v567_v44 = vmul.f32 %v1175_v35, %v566_v39 }
 0x4b5   : > { %v568_v45 = vmul.f32 0.5, %v567_v44 }
 0x4b7   : > { %v569_v46 = vsub.f32 1.5, %v568_v45 }
 0x4b9   : > { %v570_v47 = vmul.f32 %v1175_v35, %v569_v46 }
 0x4bb   : > { %v574_v49 = vsel %vm573_vm9, %v1175_v35, %v570_v47  ;;  %v863_v35 = vperm.slane %v1466_v5, 5 }
 0x4bc   : > { %v575_v51 = vmul.f32 %v574_v49, %v1512_v2 }
 0x4be   : > { %v577_v52 = vmul.f32 %v576_v48, %v575_v51 }
 0x4c0   : > { %v579_v53 = vadd.f32 %v578_v50, %v577_v52 }
 0x4c2   : > { %v1522_v54 = vmul.f32 %v1474_v18, %v579_v53 }
 0x4c4   : > { %584 = vst.msk [vmem:[#allocation2 + $0x4] sm:$0xff] %vm328_vm0, %v1522_v54 }
 0x4cb   : > { %v585_v56 = vld [vmem:[#allocation2] sm:$0xff]  ;;  %v824_v4 = vld [vmem:[#allocation2 + $0x8] sm:$0xff] }
 0x4cc   : > { %v614_v57 = vld [vmem:[#allocation2 + $0x1] sm:$0xff]  ;;  %1080 = vmatmul.msk.f32.vlgmr.msrb.gmra.mxu0 %vm328_vm0, %v585_v56 }
 0x4cd   : > { %v644_v58 = vld [vmem:[#allocation2 + $0x2] sm:$0xff]  ;;  %1081 = vmatmul.msk.f32.vlgmr.msrb.gmra.mxu2 %vm328_vm0, %v614_v57  ;;  %845 = vmatpush.msrb.mxu0 %v829_v55 }
 0x4ce   : > { %v674_v59 = vld [vmem:[#allocation2 + $0x3] sm:$0xff]  ;;  %1082 = vmatmul.msk.f32.vlgmr.msra.gmra.mxu1 %vm328_vm0, %v644_v58  ;;  %876 = vmatpush.msrb.mxu2 %v862_v6 }
 0x4cf   : > { %1083 = vmatmul.msk.f32.vlgmr.msrb.gmra.mxu3 %vm328_vm0, %v674_v59  ;;  %846 = vmatpush.msrb.mxu0 %v828_v60  ;;  %v704_v62 = vld [vmem:[#allocation2 + $0x4] sm:$0xff] }
 0x4d0   : > { %v734_v0 = vld [vmem:[#allocation2 + $0x5] sm:$0xff]  ;;  %877 = vmatpush.msrb.mxu2 %v861_v7 }
 0x4d1   : > { %847 = vmatpush.msrb.mxu0 %v827_v61  ;;  %v764_v2 = vld [vmem:[#allocation2 + $0x6] sm:$0xff] }
 0x4d2   : > { %v794_v3 = vld [vmem:[#allocation2 + $0x7] sm:$0xff]  ;;  %878 = vmatpush.msrb.mxu2 %v860_v8 }
 0x4d3   : > { %848 = vmatpush.msrb.mxu0 %v826_v1 }
 0x4d4   : > { %1084 = vmatmul.msk.f32.vlgmr.msra.gmra.mxu0 %vm328_vm0, %v704_v62  ;;  %879 = vmatpush.msrb.mxu2 %v859_v9 }
 0x4d5   : > { %1085 = vmatmul.msk.f32.vlgmr.msra.gmra.mxu2 %vm328_vm0, %v734_v0 }
 0x4d6   : > { %1086 = vmatmul.msk.f32.vlgmr.msrb.gmra.mxu1 %vm328_vm0, %v764_v2  ;;  %880 = vmatpush.msrb.mxu2 %v858_v10 }
 0x4d7   : > { %1087 = vmatmul.msk.f32.vlgmr.msra.gmra.mxu3 %vm328_vm0, %v794_v3 }
 0x4d8   : > { %881 = vmatpush.msrb.mxu2 %v857_v11 }
 0x4da   : > { %882 = vmatpush.msrb.mxu2 %v856_v12 }
 0x4dc   : > { %1088 = vmatmul.msk.f32.vlgmr.msrb.gmra.mxu0 %vm328_vm0, %v824_v4  ;;  %883 = vmatpush.msrb.mxu2 %v855_v13 }
 0x549   : > { %v611_v14 = vpop.f32.mrf.mxu0 }
 0x54a   : > { %v612_v16 = vadd.f32 %v611_v14, %v590_v15 }
 0x54b   : > { %v670_v17 = vpop.f32.mrf.mxu1 }
 0x550   : > { %v640_v19 = vpop.f32.mrf.mxu2 }
 0x551   : > { %v643_v20 = vadd.f32 %v640_v19, %v612_v16  ;;  %v730_v23 = vpop.f32.mrf.mxu0 }
 0x552   : > { %v700_v21 = vpop.f32.mrf.mxu3 }
 0x553   : > { %v673_v22 = vadd.f32 %v670_v17, %v643_v20  ;;  %v790_v28 = vpop.f32.mrf.mxu1 }
 0x555   : > { %v703_v24 = vadd.f32 %v700_v21, %v673_v22 }
 0x557   : > { %v733_v25 = vadd.f32 %v730_v23, %v703_v24 }
 0x558   : > { %v760_v26 = vpop.f32.mrf.mxu2 }
 0x559   : > { %v763_v27 = vadd.f32 %v760_v26, %v733_v25  ;;  %v850_v32 = vpop.f32.mrf.mxu0 }
 0x55a   : > { %v820_v30 = vpop.f32.mrf.mxu3 }
 0x55b   : > { %v793_v29 = vadd.f32 %v790_v28, %v763_v27 }
 0x55d   : > { %v823_v31 = vadd.f32 %v820_v30, %v793_v29 }
 0x55f   : > { %v853_v33 = vadd.f32 %v850_v32, %v823_v31 }
 0x561   : > { %v854_v34 = vmax.f32 %v853_v33, 0.0 }
 0x563   : > { %1089 = vmatmul.msk.f32.vlgmr.msrb.gmra.mxu2 %vm864_vm10, %v854_v34 }
 0x5e6   : > { %v885_v36 = vpop.f32.mrf.mxu2 }
 0x5e7   : > { %v886_v37 = vadd.f32 %v885_v36, %v863_v35 }
 0x5e9   : > { %v888_v38 = vadd.f32 %v886_v37, %v1522_v54 }
 0x5eb   : > { %v889_v39 = vsel %vm328_vm0, %v888_v38, 0.0 }
 0x5ec   : > { %890 = vadd.xlane.f32.xlu2 %v889_v39 }
 0x65f   : > { %v891_v40 = vpop.xlane.xlu2 %890 }
 0x660   : > { %v892_v41 = vmul.f32 %v891_v40, %v1509_v63 }
 0x662   : > { %v893_v42 = vsub.f32 %v888_v38, %v892_v41 }
 0x664   : > { %v894_v43 = vmul.f32 %v893_v42, %v893_v42 }
 0x666   : > { %v895_v44 = vsel %vm328_vm0, %v894_v43, 0.0 }
 0x667   : > { %896 = vadd.xlane.f32.xlu2 %v895_v44 }
 0x668   : > { %1247 = shalt.err (!%p1244_p8)
}
 0x669   : > { %s1333_s26 = smov 128   ;;  %s1334_s22 = smov 256   ;;  %v911_v54 = vperm.slane %v1466_v5, 6  ;;  %v913_v56 = vperm.slane %v1466_v5, 7 }
 0x66a   : > { %s1335_s23 = smov 8   ;;  %s1064_s1 = sshll.u32 %s1487_s24, 3 }
 0x66b   : > { %1101 = dma.vmem_to_hbm [thread:$0]  (%p1422_p5), %s949_s27, 256, %s951_s28, %s923_s29, %s1333_s26, %s1334_s22, %s1335_s23  }
 0x66c   : > { %s933_s27 = scalar_lea.hbm %s1629_s7, %s1092_s21  ;;  %s299_s28 = scalar_lea.vmem [#allocation8], %s1064_s1 }
 0x66d   : > { %s935_s29 = sshll.u32 %s299_s28, 4  ;;  %s937_s30 = sshll.u32 %s933_s27, 4  ;;  %s936_s29 = int_to_ptr.vmem [resolvable:$true] %s935_s29  ;;  %s938_s30 = int_to_ptr.hbm [resolvable:$true] %s937_s30 }
 0x66e   : > { %s918_s13 = scalar_lea.sflag [#allocation7], %s1487_s24  ;;  %s1262_s15 = sshra.s32 %s938_s30, 4  ;;  %s1263_s15 = int_to_ptr.hbm [resolvable:$true] %s1262_s15 }
 0x66f   : > { %s1264_s0 = scalar_lea.hbm %s1263_s15, 8  ;;  %s1268_s20 = scalar_lea.hbm %s1629_s7, 16 }
 0x670   : > { %p1265_p9 = scmp.ne.s32.totalorder %s1263_s15, %s1264_s0  ;;  %p1269_p12 = scmp.lt.s32.totalorder %s1263_s15, %s1629_s7 }
 0x671   : > { %p1270_p13 = scmp.lt.s32.totalorder %s1268_s20, %s1264_s0 }
 0x672   : > { %p1266_p10 = pnand %p1265_p9, %p1422_p5 }
 0x673   : > { %p1271_p0 = por %p1270_p13, %p1269_p12 }
 0x674   : > { %p1267_p11 = pneg %p1266_p10 }
 0x676   : > { %p1272_p1 = pnand %p1271_p0, %p1267_p11 }
 0x6da   : > { %v897_v45 = vpop.xlane.xlu2 %896 }
 0x6db   : > { %v898_v46 = vmul.f32 %v897_v45, %v1509_v63 }
 0x6dd   : > { %v899_v47 = vadd.f32 1e-05, %v898_v46 }
 0x6df   : > { %1176 = vrsqrt.f32 %v899_v47  ;;  %vm906_vm12 = vweird.f32 %v899_v47 }
 0x6e5   : > { %v1177_v48 = vpop.eup %1176 }
 0x6e6   : > { %v901_v49 = vmul.f32 %v1177_v48, %v899_v47  ;;  %vm907_vm11 = vweird.f32 %v1177_v48 }
 0x6e7   : > { %vm908_vm13 = vmor %vm906_vm12, %vm907_vm11 }
 0x6e8   : > { %v902_v50 = vmul.f32 %v1177_v48, %v901_v49 }
 0x6ea   : > { %v903_v51 = vmul.f32 0.5, %v902_v50 }
 0x6ec   : > { %v904_v52 = vsub.f32 1.5, %v903_v51 }
 0x6ee   : > { %v905_v53 = vmul.f32 %v1177_v48, %v904_v52 }
 0x6f0   : > { %v909_v55 = vsel %vm908_vm13, %v1177_v48, %v905_v53 }
 0x6f1   : > { %v910_v63 = vmul.f32 %v909_v55, %v893_v42 }
 0x6f3   : > { %v912_v57 = vmul.f32 %v911_v54, %v910_v63 }
 0x6f5   : > { %v914_v58 = vadd.f32 %v913_v56, %v912_v57 }
 0x6f7   : > { %v915_v59 = vmul.f32 %v1474_v18, %v914_v58 }
 0x6f9   : > { %916 = vst.msk [vmem:[%s299_s28] sm:$0xff] %vm328_vm0, %v915_v59 }
 0x6fa   : > { %1275 = shalt.err (!%p1272_p1)
}
 0x6fb   : > { %1100 = dma.vmem_to_hbm [thread:$0]  (%p1422_p5), %s936_s29, 128, %s938_s30, %s918_s13  }
 0x6fc PF: > { %p1117_p2 = scmp.ge.s32.totalorder %s1320_s12, 2  ;;  %s965_s24 = sand.u32 1, %s1308_s9  }
 0x6fd   : > { %s966_s23 = scalar_lea.sflag [#allocation7], %s965_s24 }
 0x6fe   : > { %p1109_p3 = pnand %p1117_p2, %p1426_p6 }
 0x700   : > { %p1110_p4 = pneg %p1109_p3 }
 0x702   : > { %1299 = dma.done.wait (%p1110_p4), %s966_s23, 128  }
 0x703   : > { %1301 = vsyncadd (%p1110_p4), %s966_s23, 4294967168  ;;  %s976_s1 = scalar_lea.sflag [#allocation10], %s965_s24 }
 0x704   : > { %1303 = dma.done.wait (%p1110_p4), %s976_s1, 256  }
 0x705   : > { %1305 = vsyncadd (%p1110_p4), %s976_s1, 4294967040  ;;  %p31_p5 = scmp.ge.s32.totalorder %s1409_s14, 4   ;;  %s1637_s9 = smov %s1312_s10 }
 0x706   : > { %s1638_s10 = smov %s1316_s11  ;;  %s1639_s11 = smov %s1420_s17 }
 0x707   : > { %s1640_s12 = smov %s1409_s14  ;;  %33 = sbr.rel (!%p31_p5) target bundleno = 13 (0xd), region = 111 }
 0x70c   :  { %982 = vsyncpa [#allocation6], 1 }
 0x70d   :  { %984 = vsyncpa [#allocation6 + $0x1], 1 }
 0x70e   :  { %985 = vsyncpa [#allocation7], 1 }
 0x70f   :  { %987 = vsyncpa [#allocation7 + $0x1], 1 }
 0x710   :  { %988 = vsyncpa [#allocation10], 1 }
 0x711   :  { %990 = vsyncpa [#allocation10 + $0x1], 1 }

</bundles_post_ra>
